<compile_context>
chip_gen: v7x
topology: tpu7x:2x2x1
jax: 0.10.0
libtpu: 0.0.40
codegen_flags: <defaults>
</compile_context>

<pallas_src>
import numpy as np
import jax
import jax.numpy as jnp
from jax.experimental import pallas as pl
from jax.experimental.pallas import tpu as pltpu

SUBLANES = 8
LANES = 128

C_IN, C_OUT = 3, 8
H, W = 6, 2                  # chosen so C_OUT * (H+2) * (W+2) == 256 (the forward's reshape)
HP, WP = H + 2, W + 2        # 1x1 conv with padding=1 -> output spatial (HP, WP)
NSP = HP * WP                # 32 flattened output spatial positions
SUB_CONST = 0.6264


def conv1x1_sub_kernel(x_ref, p_ref, o_ref):
    # x_ref: (3, 128) f32 — row ci = input channel ci, lanes 0..31 = zero-padded
    #        spatial positions (index h*WP + w); lanes >= 32 are zero.
    # p_ref: (8, 128) f32 — lane ci (ci < 3) holds weight[:, ci]; lane 3 holds
    #        bias - 0.6264; remaining lanes zero.
    # o_ref: (8, 128) f32 — row co, lane h*WP + w = conv output minus 0.6264.
    x = x_ref[...]
    p = p_ref[...]
    # Three independent VPU broadcast products + 2-add tree (no serial acc chain).
    t0 = p[:, 0:1] * x[0:1, :]
    t1 = p[:, 1:2] * x[1:2, :]
    t2 = p[:, 2:3] * x[2:3, :]
    o_ref[...] = (t0 + t1) + (t2 + p[:, 3:4])


def prepare_params(weight, bias):
    # One-time layout of Conv2d params (hoisted out of the per-call path):
    # (8, 128) block, lanes 0..2 = weight columns, lane 3 = bias - 0.6264.
    w2 = weight.reshape(C_OUT, C_IN).astype(jnp.float32)
    c = (bias.astype(jnp.float32) - SUB_CONST)[:, None]
    packed = jnp.concatenate([w2, c], axis=1)                        # (8, 4)
    return jnp.pad(packed, ((0, 0), (0, LANES - (C_IN + 1))))        # (8, 128)


def model_forward(x, params_blk):
    # x: (1, 3, 6, 2) f32; params_blk: (8, 128) f32 (pre-layouted once).
    # padding=1 on a 1x1 conv == zero-pad spatially, then pure channel mixing
    # per position. Channels -> sublanes, flattened padded spatial -> lanes.
    xp = jnp.pad(x[0], ((0, 0), (1, 1), (1, 1)))                     # (3, 8, 4)
    x_blk = jnp.pad(xp.reshape(C_IN, NSP).astype(jnp.float32),
                    ((0, 0), (0, LANES - NSP)))                      # (3, 128)

    out_blk = pl.pallas_call(
        conv1x1_sub_kernel,
        out_shape=jax.ShapeDtypeStruct((SUBLANES, LANES), jnp.float32),
        in_specs=[pl.BlockSpec(memory_space=pltpu.MemorySpace.VMEM)] * 2,
        out_specs=pl.BlockSpec(memory_space=pltpu.MemorySpace.VMEM),
        cost_estimate=pl.CostEstimate(
            flops=2 * C_OUT * C_IN * LANES,
            transcendentals=0,
            bytes_accessed=(C_IN * LANES + 2 * SUBLANES * LANES) * 4,
        ),
    )(x_blk, params_blk)

    # Torch: conv(x).reshape(256) flattens (1, 8, 8, 4) row-major -> c*32 + h*4 + w,
    # which is exactly out_blk[:, :32] row-major.
    return out_blk[:, :NSP].reshape(256).reshape(1, 1, 16, 16)


if __name__ == "__main__":
    key = jax.random.PRNGKey(0)
    kx, kw, kb = jax.random.split(key, 3)

    x = jax.random.normal(kx, (1, C_IN, H, W), jnp.float32)
    # PyTorch Conv2d default init: U(-1/sqrt(fan_in), 1/sqrt(fan_in)), fan_in = C_IN*1*1
    bound = 1.0 / float(np.sqrt(C_IN))
    weight = jax.random.uniform(kw, (C_OUT, C_IN, 1, 1), jnp.float32, -bound, bound)
    bias = jax.random.uniform(kb, (C_OUT,), jnp.float32, -bound, bound)

    params_blk = prepare_params(weight, bias)   # built once, not per forward call
    fwd = jax.jit(model_forward)
    out = fwd(x, params_blk)
    jax.block_until_ready(out)
    assert out.shape == (1, 1, 16, 16)

    # Pure-JAX reference: conv (WITH bias) -> reshape(256) -> -0.6264 -> view(1,1,16,16)
    ref_conv = jax.lax.conv_general_dilated(
        x, weight, window_strides=(1, 1), padding=((1, 1), (1, 1)),
        dimension_numbers=("NCHW", "OIHW", "NCHW")) + bias[None, :, None, None]
    ref = (ref_conv.reshape(256) - SUB_CONST).reshape(1, 1, 16, 16)
    np.testing.assert_allclose(np.asarray(out), np.asarray(ref), rtol=1e-5, atol=1e-5)

    print("KERNEL_OK")
</pallas_src>

<mosaic_0001>
module attributes {stable_mosaic.version = 11 : i64} {
  func.func @conv1x1_sub_kernel(%arg0: memref<3x128xf32, #tpu.memory_space<vmem>>, %arg1: memref<8x128xf32, #tpu.memory_space<vmem>>, %arg2: memref<8x128xf32, #tpu.memory_space<vmem>>) attributes {dimension_semantics = [], scalar_prefetch = 0 : i64, scratch_operands = 0 : i64, tpu.core_type = #tpu.core_type<tc>} {
    %c0 = arith.constant 0 : index
    %c0_0 = arith.constant 0 : index
    %0 = vector.load %arg0[%c0, %c0_0] : memref<3x128xf32, #tpu.memory_space<vmem>>, vector<3x128xf32>
    %c0_1 = arith.constant 0 : index
    %c0_2 = arith.constant 0 : index
    %1 = vector.load %arg1[%c0_1, %c0_2] : memref<8x128xf32, #tpu.memory_space<vmem>>, vector<8x128xf32>
    %2 = vector.extract_strided_slice %1 {offsets = [0, 0], sizes = [8, 1], strides = [1, 1]} : vector<8x128xf32> to vector<8x1xf32>
    %3 = vector.extract_strided_slice %0 {offsets = [0, 0], sizes = [1, 128], strides = [1, 1]} : vector<3x128xf32> to vector<1x128xf32>
    %4 = vector.broadcast %2 : vector<8x1xf32> to vector<8x128xf32>
    %5 = vector.broadcast %3 : vector<1x128xf32> to vector<8x128xf32>
    %6 = arith.mulf %4, %5 : vector<8x128xf32>
    %7 = vector.extract_strided_slice %1 {offsets = [0, 1], sizes = [8, 1], strides = [1, 1]} : vector<8x128xf32> to vector<8x1xf32>
    %8 = vector.extract_strided_slice %0 {offsets = [1, 0], sizes = [1, 128], strides = [1, 1]} : vector<3x128xf32> to vector<1x128xf32>
    %9 = vector.broadcast %7 : vector<8x1xf32> to vector<8x128xf32>
    %10 = vector.broadcast %8 : vector<1x128xf32> to vector<8x128xf32>
    %11 = arith.mulf %9, %10 : vector<8x128xf32>
    %12 = vector.extract_strided_slice %1 {offsets = [0, 2], sizes = [8, 1], strides = [1, 1]} : vector<8x128xf32> to vector<8x1xf32>
    %13 = vector.extract_strided_slice %0 {offsets = [2, 0], sizes = [1, 128], strides = [1, 1]} : vector<3x128xf32> to vector<1x128xf32>
    %14 = vector.broadcast %12 : vector<8x1xf32> to vector<8x128xf32>
    %15 = vector.broadcast %13 : vector<1x128xf32> to vector<8x128xf32>
    %16 = arith.mulf %14, %15 : vector<8x128xf32>
    %17 = arith.addf %6, %11 : vector<8x128xf32>
    %18 = vector.extract_strided_slice %1 {offsets = [0, 3], sizes = [8, 1], strides = [1, 1]} : vector<8x128xf32> to vector<8x1xf32>
    %19 = vector.broadcast %18 : vector<8x1xf32> to vector<8x128xf32>
    %20 = arith.addf %16, %19 : vector<8x128xf32>
    %21 = arith.addf %17, %20 : vector<8x128xf32>
    %c0_3 = arith.constant 0 : index
    %c0_4 = arith.constant 0 : index
    %22 = vector.load %arg2[%c0_3, %c0_4] : memref<8x128xf32, #tpu.memory_space<vmem>>, vector<8x128xf32>
    tpu.vector_store %arg2[%c0_3, %c0_4], %21 {strides = array<i32>} : memref<8x128xf32, #tpu.memory_space<vmem>>, vector<8x128xf32>,
    return
  }
}

</mosaic_0001>

<bundles_post_ra>
// kernel: model_forward.1
= control target key start
LH: loop header
LB: loop body
LE: loop exit
PB: predicated region body
PF: predicated region fallthrough
CT: control target
= control target key end

     0   :  { %v62_v0 = vmov 2   ;;  %v63_v1 = vmov 0   ;;  %v64_v3 = vmov 3   ;;  %v65_v4 = vmov 1   ;;  %s90_s1 = inlined_call_operand.vmem [shape: f32[8,128], index: 1, kind: input, shape index: {}]   ;;  %s91_s0 = inlined_call_operand.vmem [shape: f32[3,128], index: 0, kind: input, shape index: {}]   ;;  %s92_s2 = inlined_call_operand.vmem [shape: f32[8,128], index: 2, kind: output, shape index: {}]  }
   0x1   :  { %59 = vset.pattern.permute.xlu1 %v62_v0  ;;  %57 = vset.pattern.permute.xlu0 %v63_v1  ;;  %v12_v2 = vld [vmem:[%s90_s1] sm:$0xff]  ;;  %v18_v5 = vlaneseq }
   0x2   :  { %33 = vperm.xlu1 %59, %v12_v2   ;;  %15 = vperm.xlu0 %57, %v12_v2   ;;  %v11_v10 = vld [vmem:[%s91_s0] sm:$0x7] }
   0x3   :  { %v19_v6 = vshrl.u32 %v18_v5, 7 }
   0x5   :  { %v38_v7 = vsub.s32 2, %v19_v6  ;;  %v20_v8 = vsub.s32 0, %v19_v6  ;;  %v29_v9 = vsub.s32 1, %v19_v6 }
   0x6   :  { %60 = vset.pattern.permute.xlu1 %v64_v3  ;;  %58 = vset.pattern.permute.xlu0 %v65_v4 }
   0x7   :  { %43 = vperm.xlu1 %60, %v12_v2   ;;  %24 = vperm.xlu0 %58, %v12_v2   ;;  %v39_v13 = vrot.slane %v11_v10, %v38_v7  ;;  %v21_v14 = vrot.slane %v11_v10, %v20_v8  ;;  %v30_v15 = vrot.slane %v11_v10, %v29_v9 }
   0xb   :  { %61 = vset.pattern.permute.xlu0 %v64_v3 }
  0x81   :  { %v16_v11 = vpop.permute.xlu0 %15  ;;  %v34_v12 = vpop.permute.xlu1 %33 }
  0x82   :  { %v40_v16 = vmul.f32 %v39_v13, %v34_v12  ;;  %v22_v19 = vmul.f32 %v21_v14, %v16_v11 }
  0x86   :  { %v44_v17 = vpop.permute.xlu1 %43  ;;  %v25_v18 = vpop.permute.xlu0 %24 }
  0x87   :  { %v31_v20 = vmul.f32 %v30_v15, %v25_v18  ;;  %v46_v21 = vadd.f32 %v44_v17, %v40_v16 }
  0x89   :  { %v41_v22 = vadd.f32 %v31_v20, %v22_v19 }
  0x8b   :  { %v47_v23 = vadd.f32 %v46_v21, %v41_v22 }
  0x8d   :  { %48 = vst [vmem:[%s92_s2] sm:$0xff] %v47_v23 }

</bundles_post_ra>
